<compile_context>
chip_gen: v5e
topology: v5e:2x2
jax: 0.10.0
libtpu: 0.0.40
codegen_flags: <defaults>
</compile_context>

<pallas_src>
import functools

import jax
import jax.numpy as jnp
from jax.experimental import pallas as pl
from jax.experimental.pallas import tpu as pltpu


@functools.lru_cache(maxsize=None)
def _roll_shift_sign() -> int:
    """One-off 1-vreg probe pinning pltpu.roll's rotation direction.

    Returns +1 if pltpu.roll(x, s, axis) == jnp.roll(x, s, axis)
    (result[j] = x[(j - s) % n]), else -1.  Makes the conv tap shifts
    convention-independent.
    """
    def probe(x_ref, o_ref):
        o_ref[...] = pltpu.roll(x_ref[...], 1, 1)

    x = jnp.tile(jnp.arange(128, dtype=jnp.float32)[None, :], (8, 1))
    y = pl.pallas_call(
        probe, out_shape=jax.ShapeDtypeStruct((8, 128), jnp.float32))(x)
    return 1 if float(y[0, 1]) == 0.0 else -1


def _stacked_blocks_kernel(x_ref, w_ref, b_ref, mask_ref, out_ref, *,
                           wp, roll_sign):
    """Fused StackedBlocks for one batch element (entire block stack per step).

    x_ref    : (1, C, LP)  f32   padded-flat input image
    w_ref    : (nb, C, 9C) bf16  per-block conv weights, BN scale folded, tap-major
    b_ref    : (nb, C, 1)  f32   per-block folded BN bias
    mask_ref : (1, LP)     f32   1.0 on interior pixels, 0.0 on halo / lane tail
    out_ref  : (1, C, LP)  f32   padded-flat output activation
    """
    n_blocks = w_ref.shape[0]
    lp = x_ref.shape[-1]

    mask = mask_ref[...]                     # (1, LP), hoisted once
    act0 = x_ref[0]                          # (C, LP) f32, halo/tail already zero

    # Tap (dy, dx) reads the input at flat offset s = (dy-1)*Wp + (dx-1)
    # relative to the output pixel (both in padded coordinates); realized as a
    # lane rotation on the XLU.
    shifts = [(-roll_sign * ((dy - 1) * wp + (dx - 1))) % lp
              for dy in range(3) for dx in range(3)]

    def conv_bn_relu(act, w_flat, bias):
        act_bf = act.astype(jnp.bfloat16)                 # cast once, roll bf16
        patches = jnp.concatenate(
            [pltpu.roll(act_bf, shift=s, axis=1) for s in shifts],
            axis=0)                                       # (9C, LP) bf16
        y = jnp.dot(w_flat, patches,
                    preferred_element_type=jnp.float32)   # (C, LP) f32, lane-dense
        y = jnp.maximum(y + bias, 0.0)                    # folded BN bias + ReLU
        return y * mask                                   # re-zero halo & lane tail

    def block_body(k, act):
        w_flat = w_ref[k]                                 # (C, 9C) bf16, VMEM resident
        bias = b_ref[k]                                   # (C, 1)  f32
        y = conv_bn_relu(act, w_flat, bias)
        y = conv_bn_relu(y, w_flat, bias)                 # net2 is net1: shared weights
        return y + act                                    # residual

    act = jax.lax.fori_loop(0, n_blocks, block_body, act0, unroll=True)
    out_ref[0] = act.astype(out_ref.dtype)


def stacked_blocks(x_nchw, w_stack_bf16, b_stack):
    """StackedBlocks forward.  Input/output are NCHW to match PyTorch.

    w_stack_bf16 : (n_blocks, C, 9*C) bfloat16, BN scale folded in;
                   column index = (kh*3 + kw)*C + c_in.
    b_stack      : (n_blocks, C, 1)   float32, folded BN bias.
    """
    N, C, H, W = x_nchw.shape
    n_blocks = w_stack_bf16.shape[0]
    hp, wp = H + 2, W + 2
    p = hp * wp
    lp = ((p + 127) // 128) * 128          # lane-dense (multiple of 128)

    # Zero-pad spatially (conv padding=1) and flatten to a lane-dense
    # padded-coordinate slab (N, C, LP); the tail [P, LP) stays zero.
    x_pad = jnp.pad(x_nchw, ((0, 0), (0, 0), (1, 1), (1, 1)))
    x_flat = jnp.pad(x_pad.reshape(N, C, p), ((0, 0), (0, 0), (0, lp - p)))

    # Interior-pixel mask in the same padded-flat coordinates.
    mask = jnp.pad(jnp.ones((H, W), jnp.float32), ((1, 1), (1, 1)))
    mask = jnp.pad(mask.reshape(1, p), ((0, 0), (0, lp - p)))

    kernel = functools.partial(_stacked_blocks_kernel, wp=wp,
                               roll_sign=_roll_shift_sign())

    out_flat = pl.pallas_call(
        kernel,
        out_shape=jax.ShapeDtypeStruct((N, C, lp), x_nchw.dtype),
        grid_spec=pltpu.PrefetchScalarGridSpec(
            num_scalar_prefetch=0,
            grid=(N,),
            in_specs=[
                pl.BlockSpec((1, C, lp), lambda b: (b, 0, 0)),
                # Whole weight/bias/mask stacks stay VMEM-resident (constant
                # index_map -> fetched once, never re-DMA'd per grid step).
                pl.BlockSpec((n_blocks, C, 9 * C), lambda b: (0, 0, 0)),
                pl.BlockSpec((n_blocks, C, 1), lambda b: (0, 0, 0)),
                pl.BlockSpec((1, lp), lambda b: (0, 0)),
            ],
            out_specs=pl.BlockSpec((1, C, lp), lambda b: (b, 0, 0)),
        ),
        compiler_params=pltpu.CompilerParams(
            dimension_semantics=("parallel",),
            vmem_limit_bytes=32 * 1024 * 1024,
        ),
    )(x_flat, w_stack_bf16, b_stack, mask)

    # Drop the lane tail + conv halo; layout is already channels-first, so only
    # reshape/slice plumbing is needed (no transpose).
    return out_flat[:, :, :p].reshape(N, C, hp, wp)[:, :, 1:H + 1, 1:W + 1]


# ---------------- pure-JAX f32 reference (correctness self-check) ----------------
def _ref_block_nchw(x, w_oihw, scale, bias):
    def cbr(t):
        y = jax.lax.conv_general_dilated(
            t, w_oihw, window_strides=(1, 1), padding=((1, 1), (1, 1)),
            dimension_numbers=("NCHW", "OIHW", "NCHW"))
        return jnp.maximum(y * scale[None, :, None, None]
                           + bias[None, :, None, None], 0.0)

    return cbr(cbr(x)) + x


if __name__ == "__main__":
    n_blocks = 2
    N, C, H, W = 2, 32, 16, 16
    eps = 1e-5

    key = jax.random.PRNGKey(0)
    keys = jax.random.split(key, 1 + 3 * n_blocks)
    x_nchw = jax.random.normal(keys[0], (N, C, H, W), jnp.float32)

    w_flat_list, b_list, ref_params = [], [], []
    for i in range(n_blocks):
        kw, kg, kb = keys[1 + 3 * i: 4 + 3 * i]
        # PyTorch conv weight is (Cout, Cin, kH, kW); bias=False.
        w_oihw = jax.random.normal(kw, (C, C, 3, 3), jnp.float32) * 0.05
        gamma = 1.0 + 0.1 * jax.random.normal(kg, (C,), jnp.float32)
        beta = 0.1 * jax.random.normal(kb, (C,), jnp.float32)
        run_mean = jnp.zeros((C,), jnp.float32)
        run_var = jnp.ones((C,), jnp.float32)
        scale = gamma / jnp.sqrt(run_var + eps)
        bias = beta - run_mean * scale

        # Fold BN scale into the conv weight and flatten taps so that
        # w_flat[co, (kh*3+kw)*C + ci] = w[co, ci, kh, kw] * scale[co].
        w_scaled = w_oihw * scale[:, None, None, None]
        w_flat_list.append(
            jnp.transpose(w_scaled, (0, 2, 3, 1)).reshape(C, 9 * C))
        b_list.append(bias.reshape(C, 1))
        ref_params.append((w_oihw, scale, bias))

    w_stack = jnp.stack(w_flat_list, 0).astype(jnp.bfloat16)  # (nb, C, 9C)
    b_stack = jnp.stack(b_list, 0)                            # (nb, C, 1) f32

    out = jax.block_until_ready(stacked_blocks(x_nchw, w_stack, b_stack))

    ref = x_nchw
    for w_oihw, s, b in ref_params:
        ref = _ref_block_nchw(ref, w_oihw, s, b)

    assert out.shape == (N, C, H, W)
    # bf16 MXU operands -> looser tolerance than a pure-f32 comparison.
    max_err = float(jnp.max(jnp.abs(out - ref)))
    assert jnp.allclose(out, ref, atol=1e-1, rtol=5e-2), max_err

    print("KERNEL_OK")
</pallas_src>

<mosaic_0001>
module attributes {stable_mosaic.version = 11 : i64} {
  func.func @probe(%arg0: memref<8x128xf32, #tpu.memory_space<vmem>>, %arg1: memref<8x128xf32, #tpu.memory_space<vmem>>) attributes {dimension_semantics = [], scalar_prefetch = 0 : i64, scratch_operands = 0 : i64, tpu.core_type = #tpu.core_type<tc>} {
    %c0 = arith.constant 0 : index
    %c0_0 = arith.constant 0 : index
    %0 = vector.load %arg0[%c0, %c0_0] : memref<8x128xf32, #tpu.memory_space<vmem>>, vector<8x128xf32>
    %c1_i32 = arith.constant 1 : i32
    %1 = tpu.dynamic_rotate %0 by %c1_i32 dim 1 : vector<8x128xf32>, i32 -> vector<8x128xf32>
    %c0_1 = arith.constant 0 : index
    %c0_2 = arith.constant 0 : index
    %2 = vector.load %arg1[%c0_1, %c0_2] : memref<8x128xf32, #tpu.memory_space<vmem>>, vector<8x128xf32>
    tpu.vector_store %arg1[%c0_1, %c0_2], %1 {strides = array<i32>} : memref<8x128xf32, #tpu.memory_space<vmem>>, vector<8x128xf32>,
    return
  }
}

</mosaic_0001>

<bundles_post_ra>
// kernel: tpu_custom_call.1
= control target key start
LH: loop header
LB: loop body
LE: loop exit
PB: predicated region body
PF: predicated region fallthrough
CT: control target
= control target key end

     0   :  { %6 = vsyncpa [#allocation3], 0  ;;  %s118_s0 = inlined_call_operand.hbm [shape: f32[8,128], index: 0, kind: input, shape index: {}]   ;;  %s119_s1 = inlined_call_operand.hbm [shape: f32[8,128], index: 1, kind: output, shape index: {}]  }
   0x1   :  { %7 = vsyncpa [#allocation4], 0  ;;  %s13_s8 = sshll.u32 %s118_s0, 4  ;;  %s99_s9 = smov [#allocation2]   ;;  %s14_s8 = int_to_ptr.hbm [resolvable:$true] %s13_s8 }
   0x2   :  { %s15_s10 = sshll.u32 %s99_s9, 4  ;;  %s16_s10 = int_to_ptr.vmem [resolvable:$true] %s15_s10 }
   0x3   :  { %18 = dma.hbm_to_vmem [thread:$0]  %s14_s8, 128, %s16_s10, [#allocation3]  }
   0x4   :  { %95 = dma.done.wait [#allocation3], 128  }
   0x5   :  { %96 = vsyncadd [#allocation3], 4294967168  ;;  %v23_v0 = vld [vmem:[#allocation2] sm:$0xff]  ;;  %s100_s11 = smov 1   ;;  %s101_s12 = smov [#allocation5]  }
   0x6   :  { %24 = vrot.lane.b32.xlu0 %v23_v0, %s100_s11  ;;  %s32_s13 = sshll.u32 %s101_s12, 4  ;;  %s34_s16 = sshll.u32 %s119_s1, 4  ;;  %s33_s13 = int_to_ptr.vmem [resolvable:$true] %s32_s13  ;;  %s35_s16 = int_to_ptr.hbm [resolvable:$true] %s34_s16 }
  0x78   :  { %v25_v1 = vpop.permute.xlu0 %24 }
  0x79   :  { %26 = vst [vmem:[#allocation5] sm:$0xff] %v25_v1 }
  0x7a   :  { %37 = dma.vmem_to_hbm [thread:$0]  %s33_s13, 128, %s35_s16, [#allocation4]  }
  0x7b   :  { %97 = dma.done.wait [#allocation4], 128  }
  0x7c   :  { %98 = vsyncadd [#allocation4], 4294967168 }
  0x7d   :  { %42 = vsyncpa [#allocation3], 1 }
  0x7e   :  { %43 = vsyncpa [#allocation4], 1 }

</bundles_post_ra>
